<compile_context>
chip_gen: v6e
topology: v6e:2x2x1
jax: 0.10.0
libtpu: 0.0.40
codegen_flags: <defaults>
</compile_context>

<pallas_src>
import functools

import jax
import jax.numpy as jnp
from jax.experimental import pallas as pl
from jax.experimental.pallas import tpu as pltpu


def _round_up(x, m):
    return ((x + m - 1) // m) * m


def adapter_kernel(x_ref, wd_ref, bd_ref, wu_ref, bu_ref, o_ref):
    # x_ref:  (tm, d_model)        compute dtype (f32 or bf16)
    # wd_ref: (d_model, bn_pad)    compute dtype
    # bd_ref: (1, bn_pad)          f32
    # wu_ref: (bn_pad, d_model)    compute dtype
    # bu_ref: (1, d_model)         f32
    # o_ref:  (tm, d_model)        out dtype
    x = x_ref[...]
    h = jnp.dot(x, wd_ref[...], preferred_element_type=jnp.float32)
    h = jnp.maximum(h + bd_ref[...], 0.0)          # bias add + ReLU in f32
    h = h.astype(wu_ref.dtype)                     # back to compute dtype for MXU
    y = jnp.dot(h, wu_ref[...], preferred_element_type=jnp.float32) + bu_ref[...]
    o_ref[...] = y.astype(o_ref.dtype)


def prepare_adapter_params(w_down, b_down, w_up, b_up, *,
                           compute_dtype=jnp.float32, lane=128):
    """One-time parameter preparation (do at load time, not per forward call):
       - transpose PyTorch (out, in) weights to (in, out) layout,
       - zero-pad the bottleneck dim to a lane-dense multiple of 128,
       - cast matmul operands to the compute dtype (biases kept in f32).
       Zero-padded bottleneck columns/rows contribute exactly 0 to the output
       (relu(0 + 0) = 0, multiplied by zero rows of W_up)."""
    bottleneck, d_model = w_down.shape
    bn_pad = _round_up(bottleneck, lane)
    pad = bn_pad - bottleneck
    wd_t = jnp.pad(w_down.T, ((0, 0), (0, pad)))                 # (d_model, bn_pad)
    wu_t = jnp.pad(w_up.T, ((0, pad), (0, 0)))                   # (bn_pad, d_model)
    bd2 = jnp.pad(b_down, (0, pad)).reshape(1, bn_pad).astype(jnp.float32)
    bu2 = b_up.reshape(1, d_model).astype(jnp.float32)
    return (wd_t.astype(compute_dtype), bd2, wu_t.astype(compute_dtype), bu2)


@functools.partial(jax.jit, static_argnames=("tm_max", "out_dtype"))
def adapter_forward(x, params, *, tm_max=512, out_dtype=None):
    """x: (..., d_model). params: output of prepare_adapter_params."""
    wd_t, bd2, wu_t, bu2 = params
    orig_shape = x.shape
    d_model = orig_shape[-1]
    bn_pad = wd_t.shape[1]
    compute_dtype = wd_t.dtype
    out_dtype = out_dtype if out_dtype is not None else x.dtype

    x2d = x.reshape(-1, d_model).astype(compute_dtype)
    M = x2d.shape[0]

    # Sublane packing: 8 rows for 32-bit, 16 for 16-bit compute dtype.
    sub = 16 if jnp.dtype(compute_dtype).itemsize == 2 else 8
    tm = max(sub, min(_round_up(tm_max, sub), _round_up(M, sub)))
    m_pad = _round_up(M, tm)
    if m_pad != M:
        x2d = jnp.pad(x2d, ((0, m_pad - M), (0, 0)))
    grid = m_pad // tm

    # Explicit VMEM budget: double-buffered x & out tiles + resident weights.
    it_c = jnp.dtype(compute_dtype).itemsize
    it_o = jnp.dtype(out_dtype).itemsize
    vmem_bytes = (2 * tm * d_model * it_c          # x tile (double-buffered)
                  + 2 * tm * d_model * it_o        # out tile (double-buffered)
                  + 2 * 2 * d_model * bn_pad * it_c  # W_down^T + W_up^T
                  + 2 * 4 * (bn_pad + d_model)     # biases (f32)
                  + (4 << 20))                     # headroom
    vmem_bytes = int(min(max(vmem_bytes, 32 << 20), 100 << 20))

    out2d = pl.pallas_call(
        adapter_kernel,
        out_shape=jax.ShapeDtypeStruct((m_pad, d_model), out_dtype),
        grid_spec=pltpu.PrefetchScalarGridSpec(
            num_scalar_prefetch=0,
            grid=(grid,),
            in_specs=[
                pl.BlockSpec((tm, d_model), lambda i: (i, 0)),         # x tile
                pl.BlockSpec((d_model, bn_pad), lambda i: (0, 0)),     # W_down^T
                pl.BlockSpec((1, bn_pad), lambda i: (0, 0)),           # b_down
                pl.BlockSpec((bn_pad, d_model), lambda i: (0, 0)),     # W_up^T
                pl.BlockSpec((1, d_model), lambda i: (0, 0)),          # b_up
            ],
            out_specs=pl.BlockSpec((tm, d_model), lambda i: (i, 0)),
        ),
        compiler_params=pltpu.CompilerParams(
            dimension_semantics=("parallel",),
            vmem_limit_bytes=vmem_bytes,
        ),
    )(x2d, wd_t, bd2, wu_t, bu2)

    return out2d[:M].reshape(orig_shape)


if __name__ == "__main__":
    # Module hyperparameters (small, synthetic).
    d_model = 32
    bottleneck = 16
    batch, seq = 2, 8

    key = jax.random.PRNGKey(0)
    k_x, k_wd, k_bd, k_wu, k_bu = jax.random.split(key, 5)

    # Deterministic "PyTorch-like" init: U(-1/sqrt(fan_in), 1/sqrt(fan_in)).
    lim_d = 1.0 / jnp.sqrt(d_model)
    lim_b = 1.0 / jnp.sqrt(bottleneck)
    w_down = jax.random.uniform(k_wd, (bottleneck, d_model), jnp.float32, -lim_d, lim_d)
    b_down = jax.random.uniform(k_bd, (bottleneck,), jnp.float32, -lim_d, lim_d)
    w_up = jax.random.uniform(k_wu, (d_model, bottleneck), jnp.float32, -lim_b, lim_b)
    b_up = jax.random.uniform(k_bu, (d_model,), jnp.float32, -lim_b, lim_b)

    x = jax.random.normal(k_x, (batch, seq, d_model), jnp.float32)

    # Pure-JAX reference (same math as the PyTorch module).
    ref = jnp.maximum(x @ w_down.T + b_down, 0.0) @ w_up.T + b_up

    # f32 path: tight tolerance.
    params_f32 = prepare_adapter_params(w_down, b_down, w_up, b_up,
                                        compute_dtype=jnp.float32)
    out = jax.block_until_ready(adapter_forward(x, params_f32))
    assert out.shape == x.shape and out.dtype == x.dtype
    assert jnp.allclose(out, ref, atol=1e-5, rtol=1e-5)

    # bf16 compute/IO path (memory-bound configs): loose tolerance.
    params_bf16 = prepare_adapter_params(w_down, b_down, w_up, b_up,
                                         compute_dtype=jnp.bfloat16)
    out_bf16 = jax.block_until_ready(
        adapter_forward(x.astype(jnp.bfloat16), params_bf16,
                        out_dtype=jnp.bfloat16))
    assert out_bf16.shape == x.shape and out_bf16.dtype == jnp.bfloat16
    assert jnp.allclose(out_bf16.astype(jnp.float32), ref, atol=5e-2, rtol=5e-2)

    print("KERNEL_OK")
</pallas_src>

<mosaic_0001>
module attributes {stable_mosaic.version = 11 : i64} {
  func.func @adapter_kernel(%arg0: i32, %arg1: memref<16x32xf32, #tpu.memory_space<vmem>>, %arg2: memref<32x128xf32, #tpu.memory_space<vmem>>, %arg3: memref<1x128xf32, #tpu.memory_space<vmem>>, %arg4: memref<128x32xf32, #tpu.memory_space<vmem>>, %arg5: memref<1x32xf32, #tpu.memory_space<vmem>>, %arg6: memref<16x32xf32, #tpu.memory_space<vmem>>) attributes {dimension_semantics = [#tpu.dimension_semantics<parallel>], iteration_bounds = array<i64: 1>, scalar_prefetch = 0 : i64, scratch_operands = 0 : i64, tpu.core_type = #tpu.core_type<tc>, window_params = [{transform_indices = @transform_0, window_bounds = array<i64: 16, 32>}, {pipeline_mode = #tpu.pipeline_mode<synchronous>, transform_indices = @transform_1, window_bounds = array<i64: 32, 128>}, {pipeline_mode = #tpu.pipeline_mode<synchronous>, transform_indices = @transform_2, window_bounds = array<i64: 1, 128>}, {pipeline_mode = #tpu.pipeline_mode<synchronous>, transform_indices = @transform_3, window_bounds = array<i64: 128, 32>}, {pipeline_mode = #tpu.pipeline_mode<synchronous>, transform_indices = @transform_4, window_bounds = array<i64: 1, 32>}, {transform_indices = @transform_5, window_bounds = array<i64: 16, 32>}]} {
    %c0 = arith.constant 0 : index
    %c0_0 = arith.constant 0 : index
    %0 = vector.load %arg1[%c0, %c0_0] : memref<16x32xf32, #tpu.memory_space<vmem>>, vector<16x32xf32>
    %c0_1 = arith.constant 0 : index
    %c0_2 = arith.constant 0 : index
    %1 = vector.load %arg2[%c0_1, %c0_2] : memref<32x128xf32, #tpu.memory_space<vmem>>, vector<32x128xf32>
    %cst = arith.constant dense<0.000000e+00> : vector<16x128xf32>
    %2 = tpu.matmul %0, %1, %cst {dimension_numbers = #tpu.dot_dimension_numbers<[1], [0], [0], [1], [0, 0, 1, 1], [], []>} : vector<16x32xf32>, vector<32x128xf32>, vector<16x128xf32> -> vector<16x128xf32>
    %c0_3 = arith.constant 0 : index
    %c0_4 = arith.constant 0 : index
    %3 = vector.load %arg3[%c0_3, %c0_4] : memref<1x128xf32, #tpu.memory_space<vmem>>, vector<1x128xf32>
    %4 = vector.broadcast %3 : vector<1x128xf32> to vector<16x128xf32>
    %5 = arith.addf %2, %4 : vector<16x128xf32>
    %cst_5 = arith.constant 0.000000e+00 : f32
    %6 = vector.broadcast %cst_5 : f32 to vector<16x128xf32>
    %7 = arith.maximumf %5, %6 : vector<16x128xf32>
    %c0_6 = arith.constant 0 : index
    %c0_7 = arith.constant 0 : index
    %8 = vector.load %arg4[%c0_6, %c0_7] : memref<128x32xf32, #tpu.memory_space<vmem>>, vector<128x32xf32>
    %cst_8 = arith.constant dense<0.000000e+00> : vector<16x32xf32>
    %9 = tpu.matmul %7, %8, %cst_8 {dimension_numbers = #tpu.dot_dimension_numbers<[1], [0], [0], [1], [0, 0, 1, 1], [], []>} : vector<16x128xf32>, vector<128x32xf32>, vector<16x32xf32> -> vector<16x32xf32>
    %c0_9 = arith.constant 0 : index
    %c0_10 = arith.constant 0 : index
    %10 = vector.load %arg5[%c0_9, %c0_10] : memref<1x32xf32, #tpu.memory_space<vmem>>, vector<1x32xf32>
    %11 = vector.broadcast %10 : vector<1x32xf32> to vector<16x32xf32>
    %12 = arith.addf %9, %11 : vector<16x32xf32>
    %c0_11 = arith.constant 0 : index
    %c0_12 = arith.constant 0 : index
    %13 = vector.load %arg6[%c0_11, %c0_12] : memref<16x32xf32, #tpu.memory_space<vmem>>, vector<16x32xf32>
    tpu.vector_store %arg6[%c0_11, %c0_12], %12 {strides = array<i32>} : memref<16x32xf32, #tpu.memory_space<vmem>>, vector<16x32xf32>,
    return
  }
  func.func @transform_0(%arg0: i32) -> (i32, i32) {
    %c0_i32 = arith.constant 0 : i32
    %c0_i32_0 = arith.constant 0 : i32
    return %arg0, %c0_i32 : i32, i32
  }
  func.func @transform_1(%arg0: i32) -> (i32, i32) {
    %c0_i32 = arith.constant 0 : i32
    %c0_i32_0 = arith.constant 0 : i32
    %c0_i32_1 = arith.constant 0 : i32
    return %c0_i32, %c0_i32_0 : i32, i32
  }
  func.func @transform_2(%arg0: i32) -> (i32, i32) {
    %c0_i32 = arith.constant 0 : i32
    %c0_i32_0 = arith.constant 0 : i32
    %c0_i32_1 = arith.constant 0 : i32
    return %c0_i32, %c0_i32_0 : i32, i32
  }
  func.func @transform_3(%arg0: i32) -> (i32, i32) {
    %c0_i32 = arith.constant 0 : i32
    %c0_i32_0 = arith.constant 0 : i32
    %c0_i32_1 = arith.constant 0 : i32
    return %c0_i32, %c0_i32_0 : i32, i32
  }
  func.func @transform_4(%arg0: i32) -> (i32, i32) {
    %c0_i32 = arith.constant 0 : i32
    %c0_i32_0 = arith.constant 0 : i32
    %c0_i32_1 = arith.constant 0 : i32
    return %c0_i32, %c0_i32_0 : i32, i32
  }
  func.func @transform_5(%arg0: i32) -> (i32, i32) {
    %c0_i32 = arith.constant 0 : i32
    %c0_i32_0 = arith.constant 0 : i32
    return %arg0, %c0_i32 : i32, i32
  }
}

</mosaic_0001>

<bundles_post_ra>
// kernel: adapter_forward.1
= control target key start
LH: loop header
LB: loop body
LE: loop exit
PB: predicated region body
PF: predicated region fallthrough
CT: control target
= control target key end

     0   :  { %vm34_vm0 = vcmask 261120   ;;  %s445_s0 = inlined_call_operand.vmem [shape: f32[16,32], index: 0, kind: input, shape index: {}]   ;;  %s446_s1 = inlined_call_operand.vmem [shape: f32[32,128], index: 1, kind: input, shape index: {}]   ;;  %s447_s2 = inlined_call_operand.vmem [shape: f32[1,128], index: 2, kind: input, shape index: {}]   ;;  %s448_s3 = inlined_call_operand.vmem [shape: f32[128,32], index: 3, kind: input, shape index: {}]   ;;  %s449_s4 = inlined_call_operand.vmem [shape: f32[1,32], index: 4, kind: input, shape index: {}]   ;;  %s450_s5 = inlined_call_operand.hbm [shape: f32[16,32], index: 5, kind: output, shape index: {}]  }
   0x1   :  { %v26_v0 = vld [vmem:[%s446_s1 + $0x18] sm:$0xff]  ;;  %v25_v1 = vld [vmem:[%s446_s1 + $0x10] sm:$0xff]  ;;  %v21_v2 = vld [vmem:[%s445_s0] sm:$0xff] }
   0x2   :  { %262 = vmatprep.subr.mxu0 %v26_v0  ;;  %v24_v3 = vld [vmem:[%s446_s1 + $0x8] sm:$0xff]  ;;  %270 = vmatprep.mubr.msk.f32.mxu0 %vm34_vm0, %v21_v2  ;;  %v133_v4 = vld [vmem:[%s448_s3 + $0x78] sm:$0xff]  ;;  %v132_v5 = vld [vmem:[%s448_s3 + $0x70] sm:$0xff] }
   0x3   :  { %263 = vmatpush3.msra.mxu0 %v26_v0  ;;  %273 = vmatprep.subr.mxu1 %v133_v4  ;;  %v23_v6 = vld [vmem:[%s446_s1] sm:$0xff]  ;;  %v131_v7 = vld [vmem:[%s448_s3 + $0x68] sm:$0xff] }
   0x4   :  { %264 = vmatprep.subr.mxu0 %v25_v1  ;;  %274 = vmatpush3.msra.mxu1 %v133_v4  ;;  %v22_v8 = vld [vmem:[%s445_s0 + $0x8] sm:$0xff]  ;;  %v130_v9 = vld [vmem:[%s448_s3 + $0x60] sm:$0xff] }
   0x5   :  { %265 = vmatpush3.msra.mxu0 %v25_v1  ;;  %275 = vmatprep.subr.mxu1 %v132_v5 }
   0x6   :  { %266 = vmatprep.subr.mxu0 %v24_v3  ;;  %276 = vmatpush3.msra.mxu1 %v132_v5 }
   0x7   :  { %267 = vmatpush3.msra.mxu0 %v24_v3 }
   0x8   :  { %10 = vsyncpa [#allocation3], 0  ;;  %268 = vmatprep.subr.mxu0 %v23_v6  ;;  %277 = vmatprep.subr.mxu1 %v131_v7  ;;  %v129_v10 = vld [vmem:[%s448_s3 + $0x58] sm:$0xff]  ;;  %v128_v11 = vld [vmem:[%s448_s3 + $0x50] sm:$0xff] }
   0x9   :  { %269 = vmatpush3.msra.mxu0 %v23_v6  ;;  %278 = vmatpush3.msra.mxu1 %v131_v7  ;;  %v127_v12 = vld [vmem:[%s448_s3 + $0x48] sm:$0xff]  ;;  %v126_v13 = vld [vmem:[%s448_s3 + $0x40] sm:$0xff]  ;;  %v125_v14 = vld [vmem:[%s448_s3 + $0x38] sm:$0xff] }
   0xa   :  { %271 = vmatmul.mubr.msk.f32.vlgmr.msra.gmra.mxu0 %vm34_vm0, %v22_v8  ;;  %279 = vmatprep.subr.mxu1 %v130_v9  ;;  %v124_v15 = vld [vmem:[%s448_s3 + $0x30] sm:$0xff]  ;;  %v123_v16 = vld [vmem:[%s448_s3 + $0x28] sm:$0xff]  ;;  %v122_v17 = vld [vmem:[%s448_s3 + $0x20] sm:$0xff] }
   0xb   :  { %280 = vmatpush3.msra.mxu1 %v130_v9  ;;  %v121_v18 = vld [vmem:[%s448_s3 + $0x18] sm:$0xff]  ;;  %v120_v19 = vld [vmem:[%s448_s3 + $0x10] sm:$0xff]  ;;  %v119_v20 = vld [vmem:[%s448_s3 + $0x8] sm:$0xff] }
   0xc   :  { %281 = vmatprep.subr.mxu1 %v129_v10  ;;  %v118_v21 = vld [vmem:[%s448_s3] sm:$0xff]  ;;  %s333_s3 = smov [#allocation2]  }
   0xd   :  { %282 = vmatpush3.msra.mxu1 %v129_v10  ;;  %v234_v22 = vld [vmem:[%s447_s2] ss:$0 sm:$0xff]  ;;  %s223_s13 = sshll.u32 %s333_s3, 4  ;;  %s224_s13 = int_to_ptr.vmem [resolvable:$true] %s223_s13 }
   0xe   :  { %283 = vmatprep.subr.mxu1 %v128_v11  ;;  %v237_v29 = vld [vmem:[%s449_s4] ss:$0 sm:$0xff]  ;;  %s311_s2 = scalar_lea.vmem %s224_s13, 256  ;;  %p316_p1 = scmp.lt.s32.totalorder %s224_s13, %s224_s13 }
   0xf   :  { %284 = vmatpush3.msra.mxu1 %v128_v11  ;;  %p312_p0 = scmp.ne.s32.totalorder %s224_s13, %s311_s2  ;;  %p317_p2 = scmp.lt.s32.totalorder %s311_s2, %s311_s2 }
  0x10   :  { %285 = vmatprep.subr.mxu1 %v127_v12 }
  0x11   :  { %286 = vmatpush3.msra.mxu1 %v127_v12  ;;  %p318_p3 = por %p317_p2, %p316_p1 }
  0x12   :  { %287 = vmatprep.subr.mxu1 %v126_v13 }
  0x13   :  { %288 = vmatpush3.msra.mxu1 %v126_v13  ;;  %p319_p4 = pnand %p318_p3, %p312_p0 }
  0x14   :  { %289 = vmatprep.subr.mxu1 %v125_v14 }
  0x15   :  { %290 = vmatpush3.msra.mxu1 %v125_v14 }
  0x16   :  { %291 = vmatprep.subr.mxu1 %v124_v15 }
  0x17   :  { %292 = vmatpush3.msra.mxu1 %v124_v15 }
  0x18   :  { %293 = vmatprep.subr.mxu1 %v123_v16 }
  0x19   :  { %294 = vmatpush3.msra.mxu1 %v123_v16 }
  0x1a   :  { %295 = vmatprep.subr.mxu1 %v122_v17 }
  0x1b   :  { %296 = vmatpush3.msra.mxu1 %v122_v17 }
  0x1c   :  { %297 = vmatprep.subr.mxu1 %v121_v18 }
  0x1d   :  { %298 = vmatpush3.msra.mxu1 %v121_v18 }
  0x1e   :  { %299 = vmatprep.subr.mxu1 %v120_v19 }
  0x1f   :  { %300 = vmatpush3.msra.mxu1 %v120_v19 }
  0x20   :  { %301 = vmatprep.subr.mxu1 %v119_v20 }
  0x21   :  { %302 = vmatpush3.msra.mxu1 %v119_v20 }
  0x22   :  { %303 = vmatprep.subr.mxu1 %v118_v21 }
  0x23   :  { %304 = vmatpush3.msra.mxu1 %v118_v21 }
  0xca   :  { %v272_v23 = vpop.f32.mrf.mxu0 }
  0xcb   :  { %v113_v24 = vadd.f32 %v272_v23, %v234_v22 }
  0xcc   :  { %v107_v25 = vpop.f32.mrf.mxu0 }
  0xcd   :  { %v108_v26 = vadd.f32 %v234_v22, %v107_v25  ;;  %v117_v28 = vmax.f32 %v113_v24, 0.0 }
  0xcf   :  { %v116_v27 = vmax.f32 %v108_v26, 0.0 }
  0xd1   :  { %305 = vmatprep.mubr.f32.mxu1 %v116_v27 }
  0xd2   :  { %306 = vmatmul.mubr.f32.vlgmr.msra.gmra.mxu1 %v117_v28 }
 0x192   :  { %v307_v30 = vpop.f32.mrf.mxu1 }
 0x193   :  { %v213_v31 = vadd.f32 %v307_v30, %v237_v29 }
 0x194   :  { %v207_v32 = vpop.f32.mrf.mxu1 }
 0x195   :  { %217 = vst.msk [vmem:[#allocation2 + $0x8] sm:$0xff] %vm34_vm0, %v213_v31  ;;  %v208_v33 = vadd.f32 %v237_v29, %v207_v32 }
 0x197   :  { %216 = vst.msk [vmem:[#allocation2] sm:$0xff] %vm34_vm0, %v208_v33 }
 0x198   :  { %322 = shalt.err (!%p319_p4)
}
 0x199   :  { %s334_s14 = smov 128   ;;  %s335_s4 = smov 8  }
 0x19a   :  { %229 = dma.vmem_to_hbm [thread:$0]  %s224_s13, 256, %s450_s5, [#allocation3], %s334_s14, %s334_s14, %s335_s4  }
 0x19b   :  { %331 = dma.done.wait [#allocation3], 256  }
 0x19c   :  { %332 = vsyncadd [#allocation3], 4294967040 }
 0x19d   :  { %233 = vsyncpa [#allocation3], 1 }

</bundles_post_ra>
